<compile_context>
chip_gen: v7x
topology: tpu7x:2x2x1
jax: 0.10.0
libtpu: 0.0.40
codegen_flags: <defaults>
</compile_context>

<pallas_src>
import jax
import jax.numpy as jnp
from jax import lax
from jax.experimental import pallas as pl
from jax.experimental.pallas import tpu as pltpu


def _round_up(x, m):
    return (x + m - 1) // m * m


def _make_kernel(nb, Mn, Wrow):
    """One grid step = nb images.  Per image: 3 unguarded matmuls (kh = 0,1,2),
    K = 3*C_in, f32 accumulation in registers/VMEM temp, single store."""

    def kernel(e_ref, o_ref, w_ref, b_ref, out_ref):
        w0 = w_ref[0]                      # (K3, Cop) bf16   kh = 0
        w1 = w_ref[1]                      # (K3, Cop) bf16   kh = 1
        w2 = w_ref[2]                      # (K3, Cop) bf16   kh = 2
        b = b_ref[...].astype(jnp.float32)  # (1, Cop)

        for i in range(nb):                # static unroll over images in block
            # even-row tap, unshifted  -> kh = 0
            acc = jnp.dot(e_ref[i, 0:Mn, :], w0,
                          preferred_element_type=jnp.float32)
            # odd-row tap              -> kh = 1
            acc = acc + jnp.dot(o_ref[i], w1,
                                preferred_element_type=jnp.float32)
            # even-row tap, +1 output row (static, 8-aligned Wrow shift) -> kh = 2
            acc = acc + jnp.dot(e_ref[i, Wrow:Wrow + Mn, :], w2,
                                preferred_element_type=jnp.float32)
            out_ref[i] = (acc + b).astype(out_ref.dtype)

    return kernel


def downco_forward_nhwc(x, weight, bias, *, compute_dtype=jnp.bfloat16,
                        out_dtype=None):
    """3x3 / stride-2 / pad-1 conv.  x: (N,H,W,C_in) NHWC, weight: (C_out,C_in,3,3)
    PyTorch OIHW, bias: (C_out,).  Returns (N, Ho, Wo, C_out)."""
    N, H, W, C_in = x.shape
    C_out = weight.shape[0]
    out_dtype = x.dtype if out_dtype is None else out_dtype

    Ho = (H - 1) // 2 + 1
    Wo = (W - 1) // 2 + 1
    Wrow = _round_up(Wo, 8)            # 8-aligned output-row width (row-shift tiles)
    H1 = Ho + 1                        # even-row tap rows (covers kh=2 halo)
    Mn = Ho * Wrow                     # matmul rows per image (cols >= Wo are scrap)
    R_E = H1 * Wrow                    # flattened even-tap rows per image
    K3 = 3 * C_in                      # kw folded into the contraction
    # Lane-dense Cop only when C_out is large; small C_out keeps Cop = C_out to
    # avoid output write amplification.
    Cop = _round_up(C_out, 128) if C_out >= 128 else C_out

    # ---- cheap XLA glue (~1.5x the bf16 image): pad + 2 kw-folded row-tap taps ----
    Hp = 2 * Ho + 1
    Wp = 2 * Wrow + 1
    xp = jnp.pad(x, ((0, 0), (1, Hp - H - 1), (1, Wp - W - 1), (0, 0)))

    ev = xp[:, 0:2 * H1:2, :, :]       # (N, H1, Wp, C_in)  even padded rows 0..2*Ho
    od = xp[:, 1:2 * Ho:2, :, :]       # (N, Ho, Wp, C_in)  odd  padded rows 1..2*Ho-1

    def fold_kw(t):                    # concat the 3 column taps along channels
        return jnp.concatenate(
            [t[:, :, kw:kw + 2 * Wrow:2, :] for kw in range(3)], axis=-1)

    e = fold_kw(ev).reshape(N, R_E, K3).astype(compute_dtype)   # (N, R_E, 3*C_in)
    o = fold_kw(od).reshape(N, Mn, K3).astype(compute_dtype)    # (N, Mn,  3*C_in)

    # ---- weights: OIHW -> per-row-tap (3*C_in, Cop), matching kw*C_in + ci order ----
    wt = jnp.transpose(weight, (2, 3, 1, 0))                    # (kh, kw, C_in, C_out)
    w3 = wt.reshape(3, K3, C_out)
    w3 = jnp.pad(w3, ((0, 0), (0, 0), (0, Cop - C_out))).astype(compute_dtype)
    b2 = jnp.pad(bias.astype(jnp.float32), (0, Cop - C_out)).reshape(1, Cop)

    # ---- VMEM budget / images-per-block selection ----
    cd = jnp.dtype(compute_dtype).itemsize
    odt = jnp.dtype(out_dtype).itemsize
    try:
        cap = int(getattr(pltpu.get_tpu_info(), "vmem_capacity_bytes", 64 << 20))
    except Exception:  # pragma: no cover - conservative fallback
        cap = 64 << 20

    def vmem_need(nb):
        return (2 * nb * R_E * K3 * cd      # even-tap block (double-buffered)
                + 2 * nb * Mn * K3 * cd     # odd-tap block
                + 2 * 3 * K3 * Cop * cd     # weights (resident; counted x2 for safety)
                + 2 * Cop * 4               # bias
                + 2 * nb * Mn * Cop * odt   # output block
                + nb * Mn * Cop * 4)        # f32 accumulation temporaries

    # Fold several images into one block when the per-image GEMM M is small.
    target_nb = max(1, -(-512 // Mn)) if Mn < 512 else 1
    nb = 1
    for cand in range(1, N + 1):
        if N % cand:
            continue
        if cand <= target_nb and vmem_need(cand) <= int(0.5 * cap):
            nb = cand
    grid = (N // nb,)
    vmem_limit = int(min(0.85 * cap, max(32 << 20, 1.25 * vmem_need(nb))))

    cost = pl.CostEstimate(
        flops=2 * N * Ho * Wo * 9 * C_in * C_out,
        transcendentals=0,
        bytes_accessed=int(N * (R_E + Mn) * K3 * cd + 3 * K3 * Cop * cd
                           + Cop * 4 + N * Mn * Cop * odt),
    )

    out = pl.pallas_call(
        _make_kernel(nb, Mn, Wrow),
        out_shape=jax.ShapeDtypeStruct((N, Mn, Cop), out_dtype),
        grid=grid,
        in_specs=[
            pl.BlockSpec((nb, R_E, K3), lambda g: (g, 0, 0)),   # even-row taps
            pl.BlockSpec((nb, Mn, K3), lambda g: (g, 0, 0)),    # odd-row taps
            pl.BlockSpec((3, K3, Cop), lambda g: (0, 0, 0)),    # weights: DMA'd once
            pl.BlockSpec((1, Cop), lambda g: (0, 0)),           # bias:    DMA'd once
        ],
        out_specs=pl.BlockSpec((nb, Mn, Cop), lambda g: (g, 0, 0)),
        compiler_params=pltpu.CompilerParams(
            dimension_semantics=("parallel",),
            vmem_limit_bytes=vmem_limit,
        ),
        cost_estimate=cost,
    )(e, o, w3, b2)

    out = out.reshape(N, Ho, Wrow, Cop)[:, :, :Wo, :C_out]
    return out


def downco_forward(x_nchw, weight, bias, *, compute_dtype=jnp.bfloat16):
    """PyTorch-parity entry point (NCHW in / NCHW out).  The two transposes are
    XLA glue; prefer downco_forward_nhwc on the hot path."""
    x = jnp.transpose(x_nchw, (0, 2, 3, 1))
    y = downco_forward_nhwc(x, weight, bias, compute_dtype=compute_dtype)
    return jnp.transpose(y, (0, 3, 1, 2))


def init_downco_params(key, in_channels, dtype=jnp.float32):
    """Deterministic init matching Conv2d(in_channels, 2*in_channels, 3, 2, 1)."""
    c_out = in_channels * 2
    fan_in = in_channels * 3 * 3
    bound = 1.0 / jnp.sqrt(fan_in)
    kw_, kb_ = jax.random.split(key)
    weight = jax.random.uniform(kw_, (c_out, in_channels, 3, 3),
                                minval=-bound, maxval=bound, dtype=dtype)
    bias = jax.random.uniform(kb_, (c_out,), minval=-bound, maxval=bound, dtype=dtype)
    return weight, bias


if __name__ == "__main__":
    key = jax.random.PRNGKey(0)
    kx, kp = jax.random.split(key)

    N, C_in, H, W = 2, 4, 16, 16
    x = jax.random.normal(kx, (N, C_in, H, W), dtype=jnp.float32)
    weight, bias = init_downco_params(kp, C_in)

    fwd = jax.jit(downco_forward)
    y = jax.block_until_ready(fwd(x, weight, bias))

    # Reference: XLA conv with identical semantics (NCHW / OIHW, stride 2, pad 1).
    ref = lax.conv_general_dilated(
        x, weight, window_strides=(2, 2), padding=((1, 1), (1, 1)),
        dimension_numbers=("NCHW", "OIHW", "NCHW"),
    ) + bias[None, :, None, None]

    assert y.shape == ref.shape, (y.shape, ref.shape)
    max_err = float(jnp.max(jnp.abs(y - ref)))
    # bf16 operands with f32 accumulation -> loose-ish tolerance.
    assert jnp.allclose(y, ref, atol=5e-2, rtol=5e-2), max_err
    print("KERNEL_OK")
</pallas_src>

<mosaic_0001>
module attributes {stable_mosaic.version = 11 : i64} {
  func.func @kernel(%arg0: i32, %arg1: memref<2x72x12xbf16, #tpu.memory_space<vmem>>, %arg2: memref<2x64x12xbf16, #tpu.memory_space<vmem>>, %arg3: memref<3x12x8xbf16, #tpu.memory_space<vmem>>, %arg4: memref<1x8xf32, #tpu.memory_space<vmem>>, %arg5: memref<2x64x8xf32, #tpu.memory_space<vmem>>) attributes {dimension_semantics = [#tpu.dimension_semantics<parallel>], iteration_bounds = array<i64: 1>, scalar_prefetch = 0 : i64, scratch_operands = 0 : i64, tpu.core_type = #tpu.core_type<tc>, window_params = [{transform_indices = @transform_0, window_bounds = array<i64: 2, 72, 12>}, {transform_indices = @transform_1, window_bounds = array<i64: 2, 64, 12>}, {pipeline_mode = #tpu.pipeline_mode<synchronous>, transform_indices = @transform_2, window_bounds = array<i64: 3, 12, 8>}, {pipeline_mode = #tpu.pipeline_mode<synchronous>, transform_indices = @transform_3, window_bounds = array<i64: 1, 8>}, {transform_indices = @transform_4, window_bounds = array<i64: 2, 64, 8>}]} {
    %c0 = arith.constant 0 : index
    %c0_0 = arith.constant 0 : index
    %c0_1 = arith.constant 0 : index
    %0 = vector.load %arg3[%c0, %c0_0, %c0_1] : memref<3x12x8xbf16, #tpu.memory_space<vmem>>, vector<1x12x8xbf16>
    %1 = vector.shape_cast %0 : vector<1x12x8xbf16> to vector<12x8xbf16>
    %c1 = arith.constant 1 : index
    %c0_2 = arith.constant 0 : index
    %c0_3 = arith.constant 0 : index
    %2 = vector.load %arg3[%c1, %c0_2, %c0_3] : memref<3x12x8xbf16, #tpu.memory_space<vmem>>, vector<1x12x8xbf16>
    %3 = vector.shape_cast %2 : vector<1x12x8xbf16> to vector<12x8xbf16>
    %c2 = arith.constant 2 : index
    %c0_4 = arith.constant 0 : index
    %c0_5 = arith.constant 0 : index
    %4 = vector.load %arg3[%c2, %c0_4, %c0_5] : memref<3x12x8xbf16, #tpu.memory_space<vmem>>, vector<1x12x8xbf16>
    %5 = vector.shape_cast %4 : vector<1x12x8xbf16> to vector<12x8xbf16>
    %c0_6 = arith.constant 0 : index
    %c0_7 = arith.constant 0 : index
    %6 = vector.load %arg4[%c0_6, %c0_7] : memref<1x8xf32, #tpu.memory_space<vmem>>, vector<1x8xf32>
    %c0_8 = arith.constant 0 : index
    %c0_9 = arith.constant 0 : index
    %c0_10 = arith.constant 0 : index
    %7 = vector.load %arg1[%c0_8, %c0_9, %c0_10] : memref<2x72x12xbf16, #tpu.memory_space<vmem>>, vector<1x64x12xbf16>
    %8 = vector.shape_cast %7 : vector<1x64x12xbf16> to vector<64x12xbf16>
    %cst = arith.constant dense<0.000000e+00> : vector<64x8xf32>
    %9 = tpu.matmul %8, %1, %cst {dimension_numbers = #tpu.dot_dimension_numbers<[1], [0], [0], [1], [0, 0, 1, 1], [], []>} : vector<64x12xbf16>, vector<12x8xbf16>, vector<64x8xf32> -> vector<64x8xf32>
    %c0_11 = arith.constant 0 : index
    %c0_12 = arith.constant 0 : index
    %c0_13 = arith.constant 0 : index
    %10 = vector.load %arg2[%c0_11, %c0_12, %c0_13] : memref<2x64x12xbf16, #tpu.memory_space<vmem>>, vector<1x64x12xbf16>
    %11 = vector.shape_cast %10 : vector<1x64x12xbf16> to vector<64x12xbf16>
    %cst_14 = arith.constant dense<0.000000e+00> : vector<64x8xf32>
    %12 = tpu.matmul %11, %3, %cst_14 {dimension_numbers = #tpu.dot_dimension_numbers<[1], [0], [0], [1], [0, 0, 1, 1], [], []>} : vector<64x12xbf16>, vector<12x8xbf16>, vector<64x8xf32> -> vector<64x8xf32>
    %13 = arith.addf %9, %12 : vector<64x8xf32>
    %c0_15 = arith.constant 0 : index
    %c8 = arith.constant 8 : index
    %c0_16 = arith.constant 0 : index
    %14 = vector.load %arg1[%c0_15, %c8, %c0_16] : memref<2x72x12xbf16, #tpu.memory_space<vmem>>, vector<1x64x12xbf16>
    %15 = vector.shape_cast %14 : vector<1x64x12xbf16> to vector<64x12xbf16>
    %cst_17 = arith.constant dense<0.000000e+00> : vector<64x8xf32>
    %16 = tpu.matmul %15, %5, %cst_17 {dimension_numbers = #tpu.dot_dimension_numbers<[1], [0], [0], [1], [0, 0, 1, 1], [], []>} : vector<64x12xbf16>, vector<12x8xbf16>, vector<64x8xf32> -> vector<64x8xf32>
    %17 = arith.addf %13, %16 : vector<64x8xf32>
    %18 = vector.broadcast %6 : vector<1x8xf32> to vector<64x8xf32>
    %19 = arith.addf %17, %18 : vector<64x8xf32>
    %c0_18 = arith.constant 0 : index
    %c0_19 = arith.constant 0 : index
    %c0_20 = arith.constant 0 : index
    %20 = vector.load %arg5[%c0_18, %c0_19, %c0_20] : memref<2x64x8xf32, #tpu.memory_space<vmem>>, vector<1x64x8xf32>
    %21 = vector.shape_cast %20 : vector<1x64x8xf32> to vector<64x8xf32>
    %22 = vector.shape_cast %19 : vector<64x8xf32> to vector<1x64x8xf32>
    tpu.vector_store %arg5[%c0_18, %c0_19, %c0_20], %22 {strides = array<i32>} : memref<2x64x8xf32, #tpu.memory_space<vmem>>, vector<1x64x8xf32>,
    %c1_21 = arith.constant 1 : index
    %c0_22 = arith.constant 0 : index
    %c0_23 = arith.constant 0 : index
    %23 = vector.load %arg1[%c1_21, %c0_22, %c0_23] : memref<2x72x12xbf16, #tpu.memory_space<vmem>>, vector<1x64x12xbf16>
    %24 = vector.shape_cast %23 : vector<1x64x12xbf16> to vector<64x12xbf16>
    %cst_24 = arith.constant dense<0.000000e+00> : vector<64x8xf32>
    %25 = tpu.matmul %24, %1, %cst_24 {dimension_numbers = #tpu.dot_dimension_numbers<[1], [0], [0], [1], [0, 0, 1, 1], [], []>} : vector<64x12xbf16>, vector<12x8xbf16>, vector<64x8xf32> -> vector<64x8xf32>
    %c1_25 = arith.constant 1 : index
    %c0_26 = arith.constant 0 : index
    %c0_27 = arith.constant 0 : index
    %26 = vector.load %arg2[%c1_25, %c0_26, %c0_27] : memref<2x64x12xbf16, #tpu.memory_space<vmem>>, vector<1x64x12xbf16>
    %27 = vector.shape_cast %26 : vector<1x64x12xbf16> to vector<64x12xbf16>
    %cst_28 = arith.constant dense<0.000000e+00> : vector<64x8xf32>
    %28 = tpu.matmul %27, %3, %cst_28 {dimension_numbers = #tpu.dot_dimension_numbers<[1], [0], [0], [1], [0, 0, 1, 1], [], []>} : vector<64x12xbf16>, vector<12x8xbf16>, vector<64x8xf32> -> vector<64x8xf32>
    %29 = arith.addf %25, %28 : vector<64x8xf32>
    %c1_29 = arith.constant 1 : index
    %c8_30 = arith.constant 8 : index
    %c0_31 = arith.constant 0 : index
    %30 = vector.load %arg1[%c1_29, %c8_30, %c0_31] : memref<2x72x12xbf16, #tpu.memory_space<vmem>>, vector<1x64x12xbf16>
    %31 = vector.shape_cast %30 : vector<1x64x12xbf16> to vector<64x12xbf16>
    %cst_32 = arith.constant dense<0.000000e+00> : vector<64x8xf32>
    %32 = tpu.matmul %31, %5, %cst_32 {dimension_numbers = #tpu.dot_dimension_numbers<[1], [0], [0], [1], [0, 0, 1, 1], [], []>} : vector<64x12xbf16>, vector<12x8xbf16>, vector<64x8xf32> -> vector<64x8xf32>
    %33 = arith.addf %29, %32 : vector<64x8xf32>
    %34 = vector.broadcast %6 : vector<1x8xf32> to vector<64x8xf32>
    %35 = arith.addf %33, %34 : vector<64x8xf32>
    %c1_33 = arith.constant 1 : index
    %c0_34 = arith.constant 0 : index
    %c0_35 = arith.constant 0 : index
    %36 = vector.load %arg5[%c1_33, %c0_34, %c0_35] : memref<2x64x8xf32, #tpu.memory_space<vmem>>, vector<1x64x8xf32>
    %37 = vector.shape_cast %36 : vector<1x64x8xf32> to vector<64x8xf32>
    %38 = vector.shape_cast %35 : vector<64x8xf32> to vector<1x64x8xf32>
    tpu.vector_store %arg5[%c1_33, %c0_34, %c0_35], %38 {strides = array<i32>} : memref<2x64x8xf32, #tpu.memory_space<vmem>>, vector<1x64x8xf32>,
    return
  }
  func.func @transform_0(%arg0: i32) -> (i32, i32, i32) {
    %c0_i32 = arith.constant 0 : i32
    %c0_i32_0 = arith.constant 0 : i32
    %c0_i32_1 = arith.constant 0 : i32
    return %arg0, %c0_i32, %c0_i32_0 : i32, i32, i32
  }
  func.func @transform_1(%arg0: i32) -> (i32, i32, i32) {
    %c0_i32 = arith.constant 0 : i32
    %c0_i32_0 = arith.constant 0 : i32
    %c0_i32_1 = arith.constant 0 : i32
    return %arg0, %c0_i32, %c0_i32_0 : i32, i32, i32
  }
  func.func @transform_2(%arg0: i32) -> (i32, i32, i32) {
    %c0_i32 = arith.constant 0 : i32
    %c0_i32_0 = arith.constant 0 : i32
    %c0_i32_1 = arith.constant 0 : i32
    %c0_i32_2 = arith.constant 0 : i32
    return %c0_i32, %c0_i32_0, %c0_i32_1 : i32, i32, i32
  }
  func.func @transform_3(%arg0: i32) -> (i32, i32) {
    %c0_i32 = arith.constant 0 : i32
    %c0_i32_0 = arith.constant 0 : i32
    %c0_i32_1 = arith.constant 0 : i32
    return %c0_i32, %c0_i32_0 : i32, i32
  }
  func.func @transform_4(%arg0: i32) -> (i32, i32, i32) {
    %c0_i32 = arith.constant 0 : i32
    %c0_i32_0 = arith.constant 0 : i32
    %c0_i32_1 = arith.constant 0 : i32
    return %arg0, %c0_i32, %c0_i32_0 : i32, i32, i32
  }
}

</mosaic_0001>

<bundles_post_ra>
// kernel: downco_forward.1
= control target key start
LH: loop header
LB: loop body
LE: loop exit
PB: predicated region body
PF: predicated region fallthrough
CT: control target
= control target key end

     0   :  { %vm81_vm0 = vcmask 1045504   ;;  %vm68_vm1 = vcmask 97280   ;;  %vm390_vm2 = vcmask 64512   ;;  %s1194_s2 = inlined_call_operand.vmem [shape: bf16[3,12,8], index: 2, kind: input, shape index: {}]   ;;  %s1195_s1 = inlined_call_operand.vmem [shape: bf16[2,64,12], index: 1, kind: input, shape index: {}]   ;;  %s1196_s0 = inlined_call_operand.vmem [shape: bf16[2,72,12], index: 0, kind: input, shape index: {}]   ;;  %s1197_s3 = inlined_call_operand.vmem [shape: f32[1,8], index: 3, kind: input, shape index: {}]   ;;  %s1198_s4 = inlined_call_operand.vmem [shape: f32[2,64,8], index: 4, kind: output, shape index: {}]  }
   0x1   :  { %v961_v0 = vld [vmem:[%s1194_s2 + $0x8] sm:$0x3f]   ;;  %v962_v1 = vld [vmem:[%s1195_s1] sm:$0xff]   ;;  %v967_v8 = vld [vmem:[%s1195_s1 + $0x10] sm:$0xff]  }
   0x2   :  { %955 = vmatprep.subr.msk.bf16.mxu0 %vm81_vm0, %v961_v0  ;;  %958 = vmatprep.subr.msk.bf16.mxu1 %vm81_vm0, %v961_v0  ;;  %v83_v2 = vsel %vm81_vm0, %v961_v0, 0  ;;  %v963_v3 = vld [vmem:[%s1195_s1 + $0x20] sm:$0xff]   ;;  %v964_v4 = vld [vmem:[%s1195_s1 + $0x8] sm:$0xff]   ;;  %v968_v9 = vld [vmem:[%s1195_s1 + $0x30] sm:$0xff]  }
   0x3   :  { %864 = vmatpush3.bf16.msra.mxu0 %v83_v2  ;;  %894 = vmatpush3.bf16.msra.mxu1 %v83_v2  ;;  %v965_v5 = vld [vmem:[%s1194_s2] sm:$0x3f]   ;;  %v966_v6 = vld [vmem:[%s1195_s1 + $0x28] sm:$0xff]   ;;  %v969_v10 = vld [vmem:[%s1195_s1 + $0x18] sm:$0xff]  }
   0x4   :  { %865 = vmatprep.mubr.msk.bf16.mxu0 %vm68_vm1, %v962_v1  ;;  %895 = vmatprep.mubr.msk.bf16.mxu1 %vm68_vm1, %v963_v3  ;;  %v188_v7 = vsel %vm81_vm0, %v965_v5, 0  ;;  %v970_v11 = vld [vmem:[%s1195_s1 + $0x38] sm:$0xff]   ;;  %v971_v12 = vld [vmem:[%s1196_s0] sm:$0xff]   ;;  %v974_v14 = vld [vmem:[%s1194_s2 + $0x10] sm:$0x3f]  }
   0x5   :  { %956 = vmatprep.subr.msk.bf16.mxu0 %vm81_vm0, %v965_v5  ;;  %959 = vmatprep.subr.msk.bf16.mxu1 %vm81_vm0, %v965_v5  ;;  %v972_v13 = vld [vmem:[%s1196_s0 + $0x24] sm:$0xff]   ;;  %v975_v16 = vld [vmem:[%s1196_s0 + $0x2c] sm:$0xff]   ;;  %v301_v17 = vsel %vm81_vm0, %v974_v14, 0  ;;  %v977_v19 = vld [vmem:[%s1196_s0 + $0x34] sm:$0xff]  }
   0x6   :  { %866 = vmatmul.mubr.msk.bf16.vlgmr.msra.gmra.mrb[0].mxu0 %vm68_vm1, %v964_v4  ;;  %896 = vmatmul.mubr.msk.bf16.vlgmr.msra.gmra.mrb[0].mxu1 %vm68_vm1, %v966_v6  ;;  %v973_v15 = vld [vmem:[%s1196_s0 + $0x8] sm:$0xff]   ;;  %v976_v18 = vld [vmem:[%s1196_s0 + $0x10] sm:$0xff]   ;;  %v978_v20 = vld [vmem:[%s1196_s0 + $0x18] sm:$0xff]  }
   0x7   :  { %874 = vmatpush3.bf16.msra.mxu0 %v188_v7  ;;  %904 = vmatpush3.bf16.msra.mxu1 %v188_v7  ;;  %v979_v21 = vld [vmem:[%s1196_s0 + $0x3c] sm:$0xff]   ;;  %v980_v22 = vld [vmem:[%s1196_s0 + $0x4] sm:$0xff]   ;;  %v982_v24 = vld [vmem:[%s1196_s0 + $0xc] sm:$0xff]  }
   0x8   :  { %869 = vmatprep.mubr.msk.bf16.mxu0 %vm68_vm1, %v967_v8  ;;  %899 = vmatprep.mubr.msk.bf16.mxu1 %vm68_vm1, %v968_v9  ;;  %v981_v23 = vld [vmem:[%s1196_s0 + $0x28] sm:$0xff]   ;;  %v983_v25 = vld [vmem:[%s1196_s0 + $0x30] sm:$0xff]   ;;  %v985_v27 = vld [vmem:[%s1196_s0 + $0x38] sm:$0xff]  }
   0x9   :  { %957 = vmatprep.subr.msk.bf16.mxu0 %vm81_vm0, %v974_v14  ;;  %960 = vmatprep.subr.msk.bf16.mxu1 %vm81_vm0, %v974_v14  ;;  %v984_v26 = vld [vmem:[%s1196_s0 + $0x14] sm:$0xff]   ;;  %v986_v28 = vld [vmem:[%s1196_s0 + $0x1c] sm:$0xff]  }
   0xa   :  { %v987_v29 = vld [vmem:[%s1196_s0 + $0x40] sm:$0xff]  }
   0xb   :  { %v776_v30 = vld [vmem:[%s1197_s3] ss:$0 sm:$0xff] }
   0xe   :  { %870 = vmatmul.mubr.msk.bf16.gmra.mrb[4].mxu0 %vm68_vm1, %v969_v10  ;;  %900 = vmatmul.mubr.msk.bf16.gmra.mrb[4].mxu1 %vm68_vm1, %v970_v11 }
   0xf   :  { %875 = vmatprep.mubr.msk.bf16.mxu0 %vm68_vm1, %v971_v12  ;;  %905 = vmatprep.mubr.msk.bf16.mxu1 %vm68_vm1, %v972_v13 }
  0x16   :  { %876 = vmatmul.mubr.msk.bf16.vlgmr.msra.gmra.mrb[0].mxu0 %vm68_vm1, %v973_v15  ;;  %906 = vmatmul.mubr.msk.bf16.vlgmr.msra.gmra.mrb[0].mxu1 %vm68_vm1, %v975_v16 }
  0x17   :  { %884 = vmatpush3.bf16.msra.mxu0 %v301_v17  ;;  %914 = vmatpush3.bf16.msra.mxu1 %v301_v17 }
  0x18   :  { %879 = vmatprep.mubr.msk.bf16.mxu0 %vm68_vm1, %v976_v18  ;;  %909 = vmatprep.mubr.msk.bf16.mxu1 %vm68_vm1, %v977_v19 }
  0x1e   :  { %880 = vmatmul.mubr.msk.bf16.gmra.mrb[4].mxu0 %vm68_vm1, %v978_v20  ;;  %910 = vmatmul.mubr.msk.bf16.gmra.mrb[4].mxu1 %vm68_vm1, %v979_v21 }
  0x1f   :  { %885 = vmatprep.mubr.msk.bf16.mxu0 %vm68_vm1, %v980_v22  ;;  %915 = vmatprep.mubr.msk.bf16.mxu1 %vm68_vm1, %v981_v23 }
  0x26   :  { %886 = vmatmul.mubr.msk.bf16.vlgmr.msra.gmra.mrb[0].mxu0 %vm68_vm1, %v982_v24  ;;  %916 = vmatmul.mubr.msk.bf16.vlgmr.msra.gmra.mrb[0].mxu1 %vm68_vm1, %v983_v25 }
  0x27   :  { %889 = vmatprep.mubr.msk.bf16.mxu0 %vm68_vm1, %v984_v26  ;;  %919 = vmatprep.mubr.msk.bf16.mxu1 %vm68_vm1, %v985_v27 }
  0x2e   :  { %890 = vmatmul.mubr.msk.bf16.gmra.mrb[4].mxu0 %vm68_vm1, %v986_v28  ;;  %920 = vmatmul.mubr.msk.bf16.gmra.mrb[4].mxu1 %vm68_vm1, %v987_v29 }
  0xf9   :  { %v887_v31 = vpop.f32.mrb[0].mxu0  ;;  %v917_v33 = vpop.f32.mrb[0].mxu1 }
  0xfa   :  { %v384_v32 = vadd.f32 %v887_v31, %v776_v30  ;;  %v337_v34 = vpop.f32.mrb[1].mxu0  ;;  %v726_v35 = vadd.f32 %v917_v33, %v776_v30  ;;  %v685_v37 = vpop.f32.mrb[1].mxu1 }
  0xfb   :  { %v382_v36 = vadd.f32 %v776_v30, %v337_v34  ;;  %v888_v38 = vpop.f32.mrb[2].mxu0  ;;  %v724_v39 = vadd.f32 %v776_v30, %v685_v37  ;;  %v918_v41 = vpop.f32.mrb[2].mxu1 }
  0xfc   :  { %393 = vst.msk [vmem:[%s1198_s4 + $0x10] sm:$0xff] %vm390_vm2, %v384_v32  ;;  %v385_v40 = vadd.f32 %v888_v38, %v776_v30  ;;  %v340_v42 = vpop.f32.mrb[3].mxu0  ;;  %827 = vst.msk [vmem:[%s1198_s4 + $0x50] sm:$0xff] %vm390_vm2, %v726_v35  ;;  %v727_v43 = vadd.f32 %v918_v41, %v776_v30  ;;  %v688_v45 = vpop.f32.mrb[3].mxu1 }
  0xfd   :  { %391 = vst.msk [vmem:[%s1198_s4] sm:$0xff] %vm390_vm2, %v382_v36  ;;  %v383_v44 = vadd.f32 %v776_v30, %v340_v42  ;;  %825 = vst.msk [vmem:[%s1198_s4 + $0x40] sm:$0xff] %vm390_vm2, %v724_v39  ;;  %v725_v46 = vadd.f32 %v776_v30, %v688_v45 }
  0xfe   :  { %394 = vst.msk [vmem:[%s1198_s4 + $0x18] sm:$0xff] %vm390_vm2, %v385_v40  ;;  %828 = vst.msk [vmem:[%s1198_s4 + $0x58] sm:$0xff] %vm390_vm2, %v727_v43 }
  0xff   :  { %392 = vst.msk [vmem:[%s1198_s4 + $0x8] sm:$0xff] %vm390_vm2, %v383_v44  ;;  %826 = vst.msk [vmem:[%s1198_s4 + $0x48] sm:$0xff] %vm390_vm2, %v725_v46 }
 0x101   :  { %v891_v47 = vpop.f32.mrb[4].mxu0  ;;  %v921_v49 = vpop.f32.mrb[4].mxu1 }
 0x102   :  { %v388_v48 = vadd.f32 %v891_v47, %v776_v30  ;;  %v353_v50 = vpop.f32.mrb[5].mxu0  ;;  %v730_v51 = vadd.f32 %v921_v49, %v776_v30  ;;  %v701_v53 = vpop.f32.mrb[5].mxu1 }
 0x103   :  { %v386_v52 = vadd.f32 %v776_v30, %v353_v50  ;;  %v892_v54 = vpop.f32.mrb[6].mxu0  ;;  %v728_v55 = vadd.f32 %v776_v30, %v701_v53  ;;  %v922_v57 = vpop.f32.mrb[6].mxu1 }
 0x104   :  { %397 = vst.msk [vmem:[%s1198_s4 + $0x30] sm:$0xff] %vm390_vm2, %v388_v48  ;;  %v389_v56 = vadd.f32 %v892_v54, %v776_v30  ;;  %v356_v58 = vpop.f32.mrb[7].mxu0  ;;  %831 = vst.msk [vmem:[%s1198_s4 + $0x70] sm:$0xff] %vm390_vm2, %v730_v51  ;;  %v731_v59 = vadd.f32 %v922_v57, %v776_v30  ;;  %v704_v61 = vpop.f32.mrb[7].mxu1 }
 0x105   :  { %395 = vst.msk [vmem:[%s1198_s4 + $0x20] sm:$0xff] %vm390_vm2, %v386_v52  ;;  %v387_v60 = vadd.f32 %v776_v30, %v356_v58  ;;  %829 = vst.msk [vmem:[%s1198_s4 + $0x60] sm:$0xff] %vm390_vm2, %v728_v55  ;;  %v729_v62 = vadd.f32 %v776_v30, %v704_v61 }
 0x106   :  { %398 = vst.msk [vmem:[%s1198_s4 + $0x38] sm:$0xff] %vm390_vm2, %v389_v56  ;;  %832 = vst.msk [vmem:[%s1198_s4 + $0x78] sm:$0xff] %vm390_vm2, %v731_v59 }
 0x107   :  { %396 = vst.msk [vmem:[%s1198_s4 + $0x28] sm:$0xff] %vm390_vm2, %v387_v60  ;;  %830 = vst.msk [vmem:[%s1198_s4 + $0x68] sm:$0xff] %vm390_vm2, %v729_v62 }

</bundles_post_ra>
